<compile_context>
chip_gen: v7x
topology: tpu7x:2x2x1
jax: 0.10.0
libtpu: 0.0.40
codegen_flags: <defaults>
</compile_context>

<pallas_src>
import functools

import jax
import jax.numpy as jnp
from jax import lax
from jax.experimental import pallas as pl
from jax.experimental.pallas import tpu as pltpu
import numpy as np

# ---------------- problem sizes (small, consistent with the module) ----------
B = 2           # batch
TX = 8          # texts * words
TY = 16         # images * (num_patches + 1)
D = 32          # model dim
DIM_HEAD = 16
HEADS = 2
INNER = DIM_HEAD * HEADS          # == 32
FFW_MULT = 4
FFW_INNER = D * FFW_MULT          # == 128
LN_EPS = 1e-5
SCALE = DIM_HEAD ** (-0.5)


def _gelu_exact(x):
    # PyTorch nn.GELU() default = exact (erf) formulation.
    return 0.5 * x * (1.0 + lax.erf(x / jnp.sqrt(2.0).astype(x.dtype)))


# ------------------------------- Pallas kernel -------------------------------
def gated_xattn_kernel(x_ref, y_ref, mask_ref,
                       wq_ref, wkv_ref, wo_ref,
                       ln_ref, w1_ref, w2_ref,
                       gates_ref,          # SMEM: [g_mca, g_ffw]
                       o_ref):
    x = x_ref[...]                         # (B*TX, D)
    y = y_ref[...]                         # (B*TY, D)

    # ---- MaskedCrossAttention (its self.norm is unused in forward) ----------
    q = jnp.dot(x, wq_ref[...], preferred_element_type=jnp.float32) * SCALE
    kv = jnp.dot(y, wkv_ref[...], preferred_element_type=jnp.float32)  # (B*TY, 2*INNER)

    neg_bias = mask_ref[...] * (-1e9)      # (B*TX, B*TY); cross-batch entries blocked

    mca_out = jnp.zeros((B * TX, D), jnp.float32)
    for h in range(HEADS):                 # static, 2 iterations
        lo = h * DIM_HEAD
        hi = lo + DIM_HEAD
        qh = q[:, lo:hi]                   # (B*TX, dh)
        kh = kv[:, lo:hi]                  # (B*TY, dh)
        vh = kv[:, INNER + lo:INNER + hi]  # (B*TY, dh)
        # contract over the trailing dh axis of both (no materialized transpose)
        logits = lax.dot_general(qh, kh, (((1,), (1,)), ((), ())),
                                 preferred_element_type=jnp.float32) + neg_bias
        logits = logits - jnp.max(logits, axis=-1, keepdims=True)
        p = jnp.exp(logits)
        p = p * pl.reciprocal(jnp.sum(p, axis=-1, keepdims=True), approx=False)
        oh = jnp.dot(p, vh, preferred_element_type=jnp.float32)        # (B*TX, dh)
        # fold to_out per head (sublane-aligned slice of Wo) -> no lane concat
        mca_out = mca_out + jnp.dot(oh, wo_ref[lo:hi, :],
                                    preferred_element_type=jnp.float32)

    # gate scalars come from SMEM; tanh applied on a tiny vector (EUP path)
    g_mca = jnp.tanh(jnp.full((1, 1), gates_ref[0], jnp.float32))
    x1 = x + mca_out * g_mca               # first residual

    # ---------------------------- FeedForward --------------------------------
    mu = jnp.mean(x1, axis=-1, keepdims=True)
    var = jnp.mean((x1 - mu) ** 2, axis=-1, keepdims=True)
    xn = (x1 - mu) * lax.rsqrt(var + LN_EPS)
    xn = xn * ln_ref[0:1, :] + ln_ref[1:2, :]

    h1 = _gelu_exact(jnp.dot(xn, w1_ref[...], preferred_element_type=jnp.float32))
    ffw_out = jnp.dot(h1, w2_ref[...], preferred_element_type=jnp.float32)
    g_ffw = jnp.tanh(jnp.full((1, 1), gates_ref[1], jnp.float32))

    o_ref[...] = (x1 + ffw_out * g_ffw).astype(o_ref.dtype)


# ------------------------------- wrapper --------------------------------------
@jax.jit
def gated_xattn_block(x, y, mask, params):
    wq, wk, wv, wo, lng, lnb, w1, w2, gmca, gffw = params

    # layout plumbing (all tiny, done once in XLA):
    x2 = x.reshape(B * TX, D)
    y2 = y.reshape(B * TY, D)
    # block-diagonal mask: cross-batch positions are "blocked" (value 1.0),
    # diagonal blocks carry the original mask -> attention stays per-batch.
    idx = jnp.arange(B)
    mask_full = jnp.ones((B, TX, B, TY), mask.dtype)
    mask_full = mask_full.at[idx, :, idx, :].set(mask)
    mask_full = mask_full.reshape(B * TX, B * TY)

    wkv = jnp.concatenate([wk, wv], axis=1)            # (D, 2*INNER)
    ln = jnp.concatenate([lng, lnb], axis=0)           # (2, D): [gamma; beta]
    gates = jnp.concatenate([gmca.reshape(-1), gffw.reshape(-1)])  # (2,)

    vmem = pl.BlockSpec(memory_space=pltpu.MemorySpace.VMEM)
    smem = pl.BlockSpec(memory_space=pltpu.MemorySpace.SMEM)

    out = pl.pallas_call(
        gated_xattn_kernel,
        out_shape=jax.ShapeDtypeStruct((B * TX, D), jnp.float32),
        in_specs=[vmem,   # x2
                  vmem,   # y2
                  vmem,   # mask_full
                  vmem,   # wq
                  vmem,   # wkv
                  vmem,   # wo
                  vmem,   # ln (gamma/beta)
                  vmem,   # w1
                  vmem,   # w2
                  smem],  # gates
        out_specs=vmem,
    )(x2, y2, mask_full, wq, wkv, wo, ln, w1, w2, gates)
    return out.reshape(B, TX, D)


# ------------------------------ pure-JAX reference ----------------------------
def reference(x, y, mask, params):
    wq, wk, wv, wo, lng, lnb, w1, w2, gmca, gffw = params
    q = jnp.einsum("btd,de->bte", x, wq) * SCALE
    k = jnp.einsum("bsd,de->bse", y, wk)
    v = jnp.einsum("bsd,de->bse", y, wv)
    outs = []
    for h in range(HEADS):
        sl = slice(h * DIM_HEAD, (h + 1) * DIM_HEAD)
        logits = jnp.einsum("bte,bse->bts", q[..., sl], k[..., sl]) + mask * (-1e9)
        p = jax.nn.softmax(logits, axis=-1)
        outs.append(jnp.einsum("bts,bse->bte", p, v[..., sl]))
    attn = jnp.concatenate(outs, axis=-1)
    x1 = x + jnp.einsum("bte,ed->btd", attn, wo) * jnp.tanh(gmca[0, 0])
    mu = jnp.mean(x1, axis=-1, keepdims=True)
    var = jnp.mean((x1 - mu) ** 2, axis=-1, keepdims=True)
    xn = (x1 - mu) / jnp.sqrt(var + LN_EPS) * lng[0] + lnb[0]
    pre = xn @ w1
    h1 = 0.5 * pre * (1.0 + lax.erf(pre / jnp.sqrt(2.0)))
    return x1 + (h1 @ w2) * jnp.tanh(gffw[0, 0])


# ----------------------------------- main --------------------------------------
if __name__ == "__main__":
    key = jax.random.PRNGKey(0)
    ks = jax.random.split(key, 12)

    x = jax.random.normal(ks[0], (B, TX, D), jnp.float32)
    y = jax.random.normal(ks[1], (B, TY, D), jnp.float32)
    mask = (jax.random.uniform(ks[2], (B, TX, TY)) > 0.7).astype(jnp.float32)

    init = lambda k, shape: 0.05 * jax.random.normal(k, shape, jnp.float32)
    wq = init(ks[3], (D, INNER))
    wk = init(ks[4], (D, INNER))
    wv = init(ks[5], (D, INNER))
    wo = init(ks[6], (INNER, D))
    lng = jnp.ones((1, D), jnp.float32)        # LayerNorm default init
    lnb = jnp.zeros((1, D), jnp.float32)
    w1 = init(ks[7], (D, FFW_INNER))
    w2 = init(ks[8], (FFW_INNER, D))
    # Module __init__ sets gates to 0.0 (output would equal x); use nonzero
    # deterministic values here so the gated compute path is exercised.
    gmca = jnp.full((1, 1), 0.5, jnp.float32)
    gffw = jnp.full((1, 1), -0.3, jnp.float32)

    params = (wq, wk, wv, wo, lng, lnb, w1, w2, gmca, gffw)

    out = gated_xattn_block(x, y, mask, params)
    jax.block_until_ready(out)

    ref = reference(x, y, mask, params)
    np.testing.assert_allclose(np.asarray(out), np.asarray(ref),
                               rtol=2e-4, atol=2e-4)
    print("KERNEL_OK")
</pallas_src>

<mosaic_0001>
module attributes {stable_mosaic.version = 11 : i64} {
  func.func @gated_xattn_kernel(%arg0: memref<16x32xf32, #tpu.memory_space<vmem>>, %arg1: memref<32x32xf32, #tpu.memory_space<vmem>>, %arg2: memref<16x32xf32, #tpu.memory_space<vmem>>, %arg3: memref<32x32xf32, #tpu.memory_space<vmem>>, %arg4: memref<32x64xf32, #tpu.memory_space<vmem>>, %arg5: memref<32x32xf32, #tpu.memory_space<vmem>>, %arg6: memref<2x32xf32, #tpu.memory_space<vmem>>, %arg7: memref<32x128xf32, #tpu.memory_space<vmem>>, %arg8: memref<128x32xf32, #tpu.memory_space<vmem>>, %arg9: memref<2xf32, #tpu.memory_space<smem>>, %arg10: memref<16x32xf32, #tpu.memory_space<vmem>>) attributes {dimension_semantics = [], scalar_prefetch = 0 : i64, scratch_operands = 0 : i64, tpu.core_type = #tpu.core_type<tc>} {
    %c0 = arith.constant 0 : index
    %c0_0 = arith.constant 0 : index
    %0 = vector.load %arg0[%c0, %c0_0] : memref<16x32xf32, #tpu.memory_space<vmem>>, vector<16x32xf32>
    %c0_1 = arith.constant 0 : index
    %c0_2 = arith.constant 0 : index
    %1 = vector.load %arg1[%c0_1, %c0_2] : memref<32x32xf32, #tpu.memory_space<vmem>>, vector<32x32xf32>
    %c0_3 = arith.constant 0 : index
    %c0_4 = arith.constant 0 : index
    %2 = vector.load %arg3[%c0_3, %c0_4] : memref<32x32xf32, #tpu.memory_space<vmem>>, vector<32x32xf32>
    %cst = arith.constant dense<0.000000e+00> : vector<16x32xf32>
    %3 = tpu.matmul %0, %2, %cst {dimension_numbers = #tpu.dot_dimension_numbers<[1], [0], [0], [1], [0, 0, 1, 1], [], []>} : vector<16x32xf32>, vector<32x32xf32>, vector<16x32xf32> -> vector<16x32xf32>
    %cst_5 = arith.constant 2.500000e-01 : f32
    %4 = vector.broadcast %cst_5 : f32 to vector<16x32xf32>
    %5 = arith.mulf %3, %4 : vector<16x32xf32>
    %c0_6 = arith.constant 0 : index
    %c0_7 = arith.constant 0 : index
    %6 = vector.load %arg4[%c0_6, %c0_7] : memref<32x64xf32, #tpu.memory_space<vmem>>, vector<32x64xf32>
    %cst_8 = arith.constant dense<0.000000e+00> : vector<32x64xf32>
    %7 = tpu.matmul %1, %6, %cst_8 {dimension_numbers = #tpu.dot_dimension_numbers<[1], [0], [0], [1], [0, 0, 1, 1], [], []>} : vector<32x32xf32>, vector<32x64xf32>, vector<32x64xf32> -> vector<32x64xf32>
    %c0_9 = arith.constant 0 : index
    %c0_10 = arith.constant 0 : index
    %8 = vector.load %arg2[%c0_9, %c0_10] : memref<16x32xf32, #tpu.memory_space<vmem>>, vector<16x32xf32>
    %cst_11 = arith.constant -1.000000e+09 : f32
    %9 = vector.broadcast %cst_11 : f32 to vector<16x32xf32>
    %10 = arith.mulf %8, %9 : vector<16x32xf32>
    %cst_12 = arith.constant 0.000000e+00 : f32
    %11 = vector.broadcast %cst_12 : f32 to vector<16x32xf32>
    %12 = vector.extract_strided_slice %5 {offsets = [0, 0], sizes = [16, 16], strides = [1, 1]} : vector<16x32xf32> to vector<16x16xf32>
    %13 = vector.extract_strided_slice %7 {offsets = [0, 0], sizes = [32, 16], strides = [1, 1]} : vector<32x64xf32> to vector<32x16xf32>
    %14 = vector.extract_strided_slice %7 {offsets = [0, 32], sizes = [32, 16], strides = [1, 1]} : vector<32x64xf32> to vector<32x16xf32>
    %cst_13 = arith.constant dense<0.000000e+00> : vector<16x32xf32>
    %15 = tpu.matmul %12, %13, %cst_13 {dimension_numbers = #tpu.dot_dimension_numbers<[1], [1], [0], [0], [0, 0, 1, 0], [], []>} : vector<16x16xf32>, vector<32x16xf32>, vector<16x32xf32> -> vector<16x32xf32>
    %16 = arith.addf %15, %10 : vector<16x32xf32>
    %cst_14 = arith.constant dense<0xFF800000> : vector<16xf32>
    %17 = vector.multi_reduction <maximumf>, %16, %cst_14 [1] : vector<16x32xf32> to vector<16xf32>
    %18 = vector.shape_cast %17 : vector<16xf32> to vector<16x1xf32>
    %19 = vector.broadcast %18 : vector<16x1xf32> to vector<16x32xf32>
    %20 = arith.subf %16, %19 : vector<16x32xf32>
    %21 = math.exp %20 : vector<16x32xf32>
    %cst_15 = arith.constant dense<0.000000e+00> : vector<16xf32>
    %22 = vector.multi_reduction <add>, %21, %cst_15 [1] : vector<16x32xf32> to vector<16xf32>
    %23 = vector.shape_cast %22 : vector<16xf32> to vector<16x1xf32>
    %24 = tpu.reciprocal %23 : vector<16x1xf32> -> vector<16x1xf32>
    %25 = vector.broadcast %24 : vector<16x1xf32> to vector<16x32xf32>
    %26 = arith.mulf %21, %25 : vector<16x32xf32>
    %cst_16 = arith.constant dense<0.000000e+00> : vector<16x16xf32>
    %27 = tpu.matmul %26, %14, %cst_16 {dimension_numbers = #tpu.dot_dimension_numbers<[1], [0], [0], [1], [0, 0, 1, 1], [], []>} : vector<16x32xf32>, vector<32x16xf32>, vector<16x16xf32> -> vector<16x16xf32>
    %c0_17 = arith.constant 0 : index
    %c0_18 = arith.constant 0 : index
    %28 = vector.load %arg5[%c0_17, %c0_18] : memref<32x32xf32, #tpu.memory_space<vmem>>, vector<16x32xf32>
    %cst_19 = arith.constant dense<0.000000e+00> : vector<16x32xf32>
    %29 = tpu.matmul %27, %28, %cst_19 {dimension_numbers = #tpu.dot_dimension_numbers<[1], [0], [0], [1], [0, 0, 1, 1], [], []>} : vector<16x16xf32>, vector<16x32xf32>, vector<16x32xf32> -> vector<16x32xf32>
    %30 = arith.addf %11, %29 : vector<16x32xf32>
    %31 = vector.extract_strided_slice %5 {offsets = [0, 16], sizes = [16, 16], strides = [1, 1]} : vector<16x32xf32> to vector<16x16xf32>
    %32 = vector.extract_strided_slice %7 {offsets = [0, 16], sizes = [32, 16], strides = [1, 1]} : vector<32x64xf32> to vector<32x16xf32>
    %33 = vector.extract_strided_slice %7 {offsets = [0, 48], sizes = [32, 16], strides = [1, 1]} : vector<32x64xf32> to vector<32x16xf32>
    %cst_20 = arith.constant dense<0.000000e+00> : vector<16x32xf32>
    %34 = tpu.matmul %31, %32, %cst_20 {dimension_numbers = #tpu.dot_dimension_numbers<[1], [1], [0], [0], [0, 0, 1, 0], [], []>} : vector<16x16xf32>, vector<32x16xf32>, vector<16x32xf32> -> vector<16x32xf32>
    %35 = arith.addf %34, %10 : vector<16x32xf32>
    %cst_21 = arith.constant dense<0xFF800000> : vector<16xf32>
    %36 = vector.multi_reduction <maximumf>, %35, %cst_21 [1] : vector<16x32xf32> to vector<16xf32>
    %37 = vector.shape_cast %36 : vector<16xf32> to vector<16x1xf32>
    %38 = vector.broadcast %37 : vector<16x1xf32> to vector<16x32xf32>
    %39 = arith.subf %35, %38 : vector<16x32xf32>
    %40 = math.exp %39 : vector<16x32xf32>
    %cst_22 = arith.constant dense<0.000000e+00> : vector<16xf32>
    %41 = vector.multi_reduction <add>, %40, %cst_22 [1] : vector<16x32xf32> to vector<16xf32>
    %42 = vector.shape_cast %41 : vector<16xf32> to vector<16x1xf32>
    %43 = tpu.reciprocal %42 : vector<16x1xf32> -> vector<16x1xf32>
    %44 = vector.broadcast %43 : vector<16x1xf32> to vector<16x32xf32>
    %45 = arith.mulf %40, %44 : vector<16x32xf32>
    %cst_23 = arith.constant dense<0.000000e+00> : vector<16x16xf32>
    %46 = tpu.matmul %45, %33, %cst_23 {dimension_numbers = #tpu.dot_dimension_numbers<[1], [0], [0], [1], [0, 0, 1, 1], [], []>} : vector<16x32xf32>, vector<32x16xf32>, vector<16x16xf32> -> vector<16x16xf32>
    %c16 = arith.constant 16 : index
    %c0_24 = arith.constant 0 : index
    %47 = vector.load %arg5[%c16, %c0_24] : memref<32x32xf32, #tpu.memory_space<vmem>>, vector<16x32xf32>
    %cst_25 = arith.constant dense<0.000000e+00> : vector<16x32xf32>
    %48 = tpu.matmul %46, %47, %cst_25 {dimension_numbers = #tpu.dot_dimension_numbers<[1], [0], [0], [1], [0, 0, 1, 1], [], []>} : vector<16x16xf32>, vector<16x32xf32>, vector<16x32xf32> -> vector<16x32xf32>
    %49 = arith.addf %30, %48 : vector<16x32xf32>
    %c0_26 = arith.constant 0 : index
    %50 = memref.load %arg9[%c0_26] : memref<2xf32, #tpu.memory_space<smem>>
    %51 = vector.broadcast %50 : f32 to vector<1x1xf32>
    %52 = math.tanh %51 : vector<1x1xf32>
    %53 = vector.broadcast %52 : vector<1x1xf32> to vector<16x32xf32>
    %54 = arith.mulf %49, %53 : vector<16x32xf32>
    %55 = arith.addf %0, %54 : vector<16x32xf32>
    %cst_27 = arith.constant dense<0.000000e+00> : vector<16xf32>
    %56 = vector.multi_reduction <add>, %55, %cst_27 [1] : vector<16x32xf32> to vector<16xf32>
    %57 = vector.shape_cast %56 : vector<16xf32> to vector<16x1xf32>
    %cst_28 = arith.constant 3.200000e+01 : f32
    %58 = vector.broadcast %cst_28 : f32 to vector<16x1xf32>
    %59 = arith.divf %57, %58 : vector<16x1xf32>
    %60 = vector.broadcast %59 : vector<16x1xf32> to vector<16x32xf32>
    %61 = arith.subf %55, %60 : vector<16x32xf32>
    %62 = arith.mulf %61, %61 : vector<16x32xf32>
    %cst_29 = arith.constant dense<0.000000e+00> : vector<16xf32>
    %63 = vector.multi_reduction <add>, %62, %cst_29 [1] : vector<16x32xf32> to vector<16xf32>
    %64 = vector.shape_cast %63 : vector<16xf32> to vector<16x1xf32>
    %cst_30 = arith.constant 3.200000e+01 : f32
    %65 = vector.broadcast %cst_30 : f32 to vector<16x1xf32>
    %66 = arith.divf %64, %65 : vector<16x1xf32>
    %67 = vector.broadcast %59 : vector<16x1xf32> to vector<16x32xf32>
    %68 = arith.subf %55, %67 : vector<16x32xf32>
    %cst_31 = arith.constant 9.99999974E-6 : f32
    %69 = vector.broadcast %cst_31 : f32 to vector<16x1xf32>
    %70 = arith.addf %66, %69 : vector<16x1xf32>
    %71 = math.rsqrt %70 : vector<16x1xf32>
    %72 = vector.broadcast %71 : vector<16x1xf32> to vector<16x32xf32>
    %73 = arith.mulf %68, %72 : vector<16x32xf32>
    %c0_32 = arith.constant 0 : index
    %c0_33 = arith.constant 0 : index
    %74 = vector.load %arg6[%c0_32, %c0_33] : memref<2x32xf32, #tpu.memory_space<vmem>>, vector<1x32xf32>
    %75 = vector.broadcast %74 : vector<1x32xf32> to vector<16x32xf32>
    %76 = arith.mulf %73, %75 : vector<16x32xf32>
    %c1 = arith.constant 1 : index
    %c0_34 = arith.constant 0 : index
    %77 = vector.load %arg6[%c1, %c0_34] : memref<2x32xf32, #tpu.memory_space<vmem>>, vector<1x32xf32>
    %78 = vector.broadcast %77 : vector<1x32xf32> to vector<16x32xf32>
    %79 = arith.addf %76, %78 : vector<16x32xf32>
    %c0_35 = arith.constant 0 : index
    %c0_36 = arith.constant 0 : index
    %80 = vector.load %arg7[%c0_35, %c0_36] : memref<32x128xf32, #tpu.memory_space<vmem>>, vector<32x128xf32>
    %cst_37 = arith.constant dense<0.000000e+00> : vector<16x128xf32>
    %81 = tpu.matmul %79, %80, %cst_37 {dimension_numbers = #tpu.dot_dimension_numbers<[1], [0], [0], [1], [0, 0, 1, 1], [], []>} : vector<16x32xf32>, vector<32x128xf32>, vector<16x128xf32> -> vector<16x128xf32>
    %cst_38 = arith.constant 5.000000e-01 : f32
    %82 = vector.broadcast %cst_38 : f32 to vector<16x128xf32>
    %83 = arith.mulf %82, %81 : vector<16x128xf32>
    %cst_39 = arith.constant 2.000000e+00 : f32
    %84 = math.sqrt %cst_39 : f32
    %85 = vector.broadcast %84 : f32 to vector<16x128xf32>
    %86 = arith.divf %81, %85 : vector<16x128xf32>
    %87 = math.erf %86 : vector<16x128xf32>
    %cst_40 = arith.constant 1.000000e+00 : f32
    %88 = vector.broadcast %cst_40 : f32 to vector<16x128xf32>
    %89 = arith.addf %88, %87 : vector<16x128xf32>
    %90 = arith.mulf %83, %89 : vector<16x128xf32>
    %c0_41 = arith.constant 0 : index
    %c0_42 = arith.constant 0 : index
    %91 = vector.load %arg8[%c0_41, %c0_42] : memref<128x32xf32, #tpu.memory_space<vmem>>, vector<128x32xf32>
    %cst_43 = arith.constant dense<0.000000e+00> : vector<16x32xf32>
    %92 = tpu.matmul %90, %91, %cst_43 {dimension_numbers = #tpu.dot_dimension_numbers<[1], [0], [0], [1], [0, 0, 1, 1], [], []>} : vector<16x128xf32>, vector<128x32xf32>, vector<16x32xf32> -> vector<16x32xf32>
    %c1_44 = arith.constant 1 : index
    %93 = memref.load %arg9[%c1_44] : memref<2xf32, #tpu.memory_space<smem>>
    %94 = vector.broadcast %93 : f32 to vector<1x1xf32>
    %95 = math.tanh %94 : vector<1x1xf32>
    %96 = vector.broadcast %95 : vector<1x1xf32> to vector<16x32xf32>
    %97 = arith.mulf %92, %96 : vector<16x32xf32>
    %98 = arith.addf %55, %97 : vector<16x32xf32>
    %c0_45 = arith.constant 0 : index
    %c0_46 = arith.constant 0 : index
    %99 = vector.load %arg10[%c0_45, %c0_46] : memref<16x32xf32, #tpu.memory_space<vmem>>, vector<16x32xf32>
    tpu.vector_store %arg10[%c0_45, %c0_46], %98 {strides = array<i32>} : memref<16x32xf32, #tpu.memory_space<vmem>>, vector<16x32xf32>,
    return
  }
}

</mosaic_0001>

<bundles_post_ra>
// kernel: gated_xattn_block.1
= control target key start
LH: loop header
LB: loop body
LE: loop exit
PB: predicated region body
PF: predicated region fallthrough
CT: control target
= control target key end

     0   :  { %15 = vsyncpa [#allocation4], 0  ;;  %s1839_s0 = inlined_call_operand.vmem [shape: f32[16,32], index: 0, kind: input, shape index: {}]   ;;  %s1840_s1 = inlined_call_operand.vmem [shape: f32[32,32], index: 1, kind: input, shape index: {}]   ;;  %s1841_s2 = inlined_call_operand.vmem [shape: f32[16,32], index: 2, kind: input, shape index: {}]   ;;  %s1842_s3 = inlined_call_operand.vmem [shape: f32[32,32], index: 3, kind: input, shape index: {}]   ;;  %s1843_s4 = inlined_call_operand.vmem [shape: f32[32,64], index: 4, kind: input, shape index: {}]   ;;  %s1844_s5 = inlined_call_operand.vmem [shape: f32[32,32], index: 5, kind: input, shape index: {}]   ;;  %s1845_s6 = inlined_call_operand.vmem [shape: f32[2,32], index: 6, kind: input, shape index: {}]   ;;  %s1846_s7 = inlined_call_operand.vmem [shape: f32[32,128], index: 7, kind: input, shape index: {}]   ;;  %s1847_s8 = inlined_call_operand.vmem [shape: f32[128,32], index: 8, kind: input, shape index: {}]   ;;  %s1848_s9 = inlined_call_operand.vmem [shape: f32[2], index: 9, kind: input, shape index: {}]   ;;  %s1849_s10 = inlined_call_operand.hbm [shape: f32[16,32], index: 10, kind: output, shape index: {}]  }
   0x1   :  { %16 = vsyncpa [#allocation3], 0  ;;  %s41_s15 = sshll.u32 %s1848_s9, 4  ;;  %s42_s15 = int_to_ptr.vmem [resolvable:$true] %s41_s15 }
   0x2   :  { %s1499_s16 = scalar_lea.vmem %s42_s15, 16  ;;  %p1504_p1 = scmp.lt.s32.totalorder %s42_s15, %s42_s15 }
   0x3   :  { %p1500_p0 = scmp.ne.s32.totalorder %s42_s15, %s1499_s16  ;;  %p1505_p2 = scmp.lt.s32.totalorder %s1499_s16, %s1499_s16 }
   0x5   :  { %p1506_p3 = por %p1505_p2, %p1504_p1 }
   0x7   :  { %p1507_p4 = pnand %p1506_p3, %p1500_p0 }
   0x9   :  { %1510 = shalt.err (!%p1507_p4)
}
   0xa   :  { %s1537_s17 = smov [#allocation2]  }
   0xb   :  { %44 = dma.vmem_to_smem %s42_s15, 16, %s1537_s17, [#allocation4]  }
   0xc   :  { %1533 = dma.done.wait [#allocation4], 16  }
   0xd   :  { %1534 = vsyncadd [#allocation4], 4294967280 }
   0xe   :  { %48 = sfence }
   0xf   :  { %v143_v0 = vld [vmem:[%s1843_s4] sm:$0xff]  ;;  %v144_v1 = vld [vmem:[%s1843_s4 + $0x8] sm:$0xff]  ;;  %v145_v2 = vld [vmem:[%s1843_s4 + $0x10] sm:$0xff]  ;;  %vm59_vm0 = vcmask 261120   ;;  %vm248_vm1 = vcmask 130048   ;;  %s837_s13 = sld [smem:[#allocation2]] }
  0x10   :  { %v1336_v3 = vpack.c.bf16 %v144_v1, %v143_v0  ;;  %v146_v4 = vld [vmem:[%s1843_s4 + $0x18] sm:$0xff]  ;;  %v51_v5 = vld [vmem:[%s1840_s1] sm:$0xff]  ;;  %v56_v8 = vld [vmem:[%s1842_s3 + $0x8] sm:$0xff]  ;;  %s1541_s24 = smov [#allocation5]  }
  0x11   :  { %v1340_v6 = vpack.c.bf16 %v146_v4, %v145_v2  ;;  %1218 = vmatprep.mubr.msk.f32.mxu1 %vm59_vm0, %v51_v5  ;;  %v55_v7 = vld [vmem:[%s1842_s3] sm:$0xff]  ;;  %v57_v9 = vld [vmem:[%s1842_s3 + $0x10] sm:$0xff]  ;;  %v58_v10 = vld [vmem:[%s1842_s3 + $0x18] sm:$0xff] }
  0x12   :  { %1337 = vmatprep.subr.bf16.mxu1 %v1336_v3  ;;  %v1328_v11 = vpack.c.bf16 %v56_v8, %v55_v7  ;;  %v1332_v12 = vpack.c.bf16 %v58_v10, %v57_v9  ;;  %v1633_v13 = vld [vmem:[%s1839_s0] sm:$0xff]  ;;  %v52_v14 = vld [vmem:[%s1840_s1 + $0x8] sm:$0xff]  ;;  %v53_v15 = vld [vmem:[%s1840_s1 + $0x10] sm:$0xff] }
  0x13   :  { %1339 = vmatpush3.bf16.msra.mxu1 %v1336_v3  ;;  %1207 = vmatprep.mubr.msk.f32.mxu0 %vm59_vm0, %v1633_v13  ;;  %v1647_v16 = vld [vmem:[%s1839_s0 + $0x8] sm:$0xff]  ;;  %v54_v17 = vld [vmem:[%s1840_s1 + $0x18] sm:$0xff]  ;;  %vm1658_vm2 = vmpackc.low %vm248_vm1, %vm248_vm1  ;;  %s1538_s0 = smov 96   ;;  %s1539_s1 = smov 112  }
  0x14   :  { %1341 = vmatprep.subr.bf16.mxu1 %v1340_v6  ;;  %1329 = vmatprep.subr.bf16.mxu0 %v1328_v11  ;;  %v244_v31 = vld [vmem:[%s1841_s2] sm:$0xff]  ;;  %v245_v32 = vld [vmem:[%s1841_s2 + $0x8] sm:$0xff]  ;;  %s1540_s2 = smov 80  }
  0x15   :  { %1331 = vmatpush3.bf16.msra.mxu0 %v1328_v11  ;;  %v1685_v33 = vmul.f32 -1e+09, %v244_v31  ;;  %v1687_v34 = vmul.f32 -1e+09, %v245_v32 }
  0x16   :  { %1333 = vmatprep.subr.bf16.mxu0 %v1332_v12 }
  0x17   :  { %1343 = vmatpush3.bf16.msra.mxu1 %v1340_v6 }
  0x19   :  { %1335 = vmatpush3.bf16.msra.mxu0 %v1332_v12 }
  0x1a   :  { %1219 = vmatmul.mubr.msk.f32.vlgmr.msra.gmra.mrb[0].mxu1 %vm59_vm0, %v52_v14 }
  0x1b   :  { %1221 = vmatprep.mubr.msk.f32.mxu1 %vm59_vm0, %v53_v15 }
  0x1c   :  { %1208 = vmatmul.mubr.msk.f32.vlgmr.msra.gmra.mrb[0].mxu0 %vm59_vm0, %v1647_v16 }
  0x1e   :  { %1222 = vmatmul.mubr.msk.f32.gmra.mrb[2].mxu1 %vm59_vm0, %v54_v17 }
  0xed   :  { %v1220_v18 = vpop.f32.mrb[0].mxu1 }
  0xee   :  { %v225_v19 = vpop.f32.mrb[1].mxu1 }
  0xef   :  { %v1344_v21 = vpack.c.bf16 %v1220_v18, %v225_v19  ;;  %v1662_v22 = vpack.i.bf16 %v1220_v18, %v225_v19  ;;  %v1209_v23 = vpop.f32.mrb[0].mxu0 }
  0xf0   :  { %v132_v25 = vpop.f32.mrb[1].mxu0  ;;  %v142_v30 = vmul.f32 0.25, %v1209_v23 }
  0xf1   :  { %v1223_v24 = vpop.f32.mrb[2].mxu1  ;;  %1346 = vmatprep.subr.msk.bf16.mxu1 %vm1658_vm2, %v1344_v21  ;;  %v141_v27 = vmul.f32 0.25, %v132_v25 }
  0xf2   :  { %v235_v26 = vpop.f32.mrb[3].mxu1  ;;  %1349 = vmatpush3.bf16.xpose.msk.msra.mxu1 %vm1658_vm2, %v1344_v21 }
  0xf3   :  { %v1350_v28 = vpack.c.bf16 %v1223_v24, %v235_v26  ;;  %v1668_v29 = vpack.i.bf16 %v1223_v24, %v235_v26  ;;  %1232 = vmatprep.mubr.msk.f32.mxu1 %vm248_vm1, %v141_v27 }
  0xf5   :  { %1447 = vrot.lane.b32.xlu1 %v1668_v29, %s1538_s0  ;;  %1352 = vmatprep.subr.msk.bf16.mxu1 %vm1658_vm2, %v1350_v28 }
  0xf9   :  { %1452 = vrot.lane.b32.xlu1 %v1662_v22, %s1539_s1 }
  0xfa   :  { %1355 = vmatpush3.bf16.xpose.msk.msra.mxu1 %vm1658_vm2, %v1350_v28 }
 0x101   :  { %1233 = vmatmul.mubr.msk.f32.vlgmr.msra.gmra.mrb[4].mxu1 %vm248_vm1, %v142_v30 }
 0x167   :  { %v1448_v43 = vpop.permute.xlu1 %1447 }
 0x168   :  { %v1450_v48 = vunpack.i.h.bf16 %v1448_v43  ;;  %v1449_v50 = vunpack.i.l.bf16 %v1448_v43 }
 0x16a   :  { %v1360_v55 = vpack.c.bf16 %v1450_v48, %v1449_v50  ;;  %v457_v48 = vld [vmem:[%s1844_s5] sm:$0xff] }
 0x16b   :  { %v1453_v53 = vpop.permute.xlu1 %1452 }
 0x16c   :  { %v1455_v56 = vunpack.i.h.bf16 %v1453_v53  ;;  %v1454_v57 = vunpack.i.l.bf16 %v1453_v53  ;;  %v838_v53 = vstv %s837_s13 }
 0x16e   :  { %v1364_v58 = vpack.c.bf16 %v1455_v56, %v1454_v57 }
 0x1d4   :  { %v1234_v35 = vpop.f32.mrb[4].mxu1 }
 0x1d5   :  { %v333_v36 = vpop.f32.mrb[5].mxu1  ;;  %v339_v38 = vadd.f32 %v1234_v35, %v1687_v34 }
 0x1d6   :  { %v334_v37 = vadd.f32 %v333_v36, %v1685_v33 }
 0x1d7   :  { %v345_v40 = vsel %vm59_vm0, %v339_v38, -inf }
 0x1d8   :  { %v342_v39 = vsel %vm59_vm0, %v334_v37, -inf }
 0x1d9   :  { %343 = vmax.xlane.f32.xlu0 %v342_v39 }
 0x1dd   :  { %346 = vmax.xlane.f32.xlu0 %v345_v40 }
 0x1f3   :  { %1442 = vrot.lane.b32.xlu0 %v1662_v22, %s1538_s0 }
 0x1f7   :  { %459 = vrot.lane.b32.xlu0 %v141_v27, %s1539_s1 }
 0x266   :  { %v344_v41 = vpop.xlane.xlu0 %343 }
 0x267   :  { %v348_v42 = vsub.f32 %v334_v37, %v344_v41  ;;  %v673_v41 = vld [vmem:[%s1844_s5 + $0x10] sm:$0xff] }
 0x269   :  { %v350_v46 = vmul.f32 1.442695, %v348_v42  ;;  %v674_v42 = vld [vmem:[%s1844_s5 + $0x18] sm:$0xff] }
 0x26a   :  { %v347_v44 = vpop.xlane.xlu0 %346 }
 0x26b   :  { %v349_v45 = vsub.f32 %v339_v38, %v347_v44  ;;  %v1384_v44 = vpack.c.bf16 %v674_v42, %v673_v41  ;;  %v987_v41 = vld [vmem:[%s1847_s8 + $0x30] sm:$0xff]  ;;  %v988_v42 = vld [vmem:[%s1847_s8 + $0x38] sm:$0xff] }
 0x26d   :  { %v352_v47 = vmul.f32 1.442695, %v349_v45 }
 0x26e   :  { %v1443_v49 = vpop.permute.xlu0 %1442 }
 0x26f   :  { %1471 = vpow2.f32 %v352_v47  ;;  %v1445_v51 = vunpack.i.h.bf16 %v1443_v49  ;;  %v1444_v52 = vunpack.i.l.bf16 %v1443_v49  ;;  %v458_v49 = vld [vmem:[%s1844_s5 + $0x8] sm:$0xff] }
 0x270   :  { %1473 = vpow2.f32 %v350_v46  ;;  %v1388_v50 = vpack.c.bf16 %v458_v49, %v457_v48  ;;  %v993_v49 = vld [vmem:[%s1847_s8 + $0x60] sm:$0xff] }
 0x271   :  { %v1356_v54 = vpack.c.bf16 %v1445_v51, %v1444_v52 }
 0x272   :  { %v460_v8 = vpop.permute.xlu0 %459 }
 0x273   :  { %1357 = vmatprep.subr.bf16.mxu1 %v1356_v54 }
 0x274   :  { %1359 = vmatpush3.bf16.msra.mxu1 %v1356_v54 }
 0x275   :  { %1361 = vmatprep.subr.bf16.mxu1 %v1360_v55 }
 0x278   :  { %1363 = vmatpush3.bf16.msra.mxu1 %v1360_v55 }
 0x279   :  { %v1472_v59 = vpop.eup %1471  ;;  %1366 = vmatprep.subr.msk.bf16.mxu1 %vm1658_vm2, %v1364_v58 }
 0x27a   :  { %v357_v60 = vsel %vm59_vm0, %v1472_v59, 0.0  ;;  %v1474_v61 = vpop.eup %1473 }
 0x27b   :  { %358 = vadd.xlane.f32.xlu1 %v357_v60  ;;  %v354_v62 = vsel %vm59_vm0, %v1474_v61, 0.0 }
 0x27f   :  { %355 = vadd.xlane.f32.xlu1 %v354_v62 }
 0x290   :  { %1457 = vrot.lane.b32.xlu1 %v1668_v29, %s1539_s1 }
 0x294   :  { %461 = vrot.lane.b32.xlu1 %v142_v30, %s1539_s1 }
 0x308   :  { %v359_v63 = vpop.xlane.xlu1 %358 }
 0x309   :  { %1475 = vrcp.f32 %v359_v63 }
 0x30c   :  { %v356_v0 = vpop.xlane.xlu1 %355 }
 0x30d   :  { %1477 = vrcp.f32 %v356_v0 }
 0x310   :  { %v1458_v1 = vpop.permute.xlu1 %1457 }
 0x311   :  { %v1460_v4 = vunpack.i.h.bf16 %v1458_v1  ;;  %v1459_v5 = vunpack.i.l.bf16 %v1458_v1 }
 0x313   :  { %v1476_v2 = vpop.eup %1475  ;;  %v1370_v9 = vpack.c.bf16 %v1460_v4, %v1459_v5 }
 0x314   :  { %v363_v7 = vmul.f32 %v1476_v2, %v1472_v59  ;;  %v462_v10 = vpop.permute.xlu1 %461 }
 0x317   :  { %v1478_v3 = vpop.eup %1477 }
 0x318   :  { %v362_v6 = vmul.f32 %v1478_v3, %v1474_v61 }
 0x31a   :  { %1243 = vmatprep.mubr.msk.f32.mxu1 %vm59_vm0, %v362_v6 }
 0x31b   :  { %1244 = vmatmul.mubr.msk.f32.vlgmr.msra.gmra.mrb[6].mxu1 %vm59_vm0, %v363_v7  ;;  %v885_v7 = vld [vmem:[%s1846_s7] sm:$0xff] }
 0x31c   :  { %1369 = vmatpush3.bf16.xpose.msk.msra.mxu1 %vm1658_vm2, %v1364_v58  ;;  %1254 = vmatprep.mubr.msk.f32.mxu1 %vm248_vm1, %v460_v8  ;;  %v886_v8 = vld [vmem:[%s1846_s7 + $0x8] sm:$0xff] }
 0x31d   :  { %1372 = vmatprep.subr.msk.bf16.mxu1 %vm1658_vm2, %v1370_v9 }
 0x324   :  { %1375 = vmatpush3.bf16.xpose.msk.msra.mxu1 %vm1658_vm2, %v1370_v9  ;;  %v1392_v9 = vpack.c.bf16 %v886_v8, %v885_v7 }
 0x326   :  { %1393 = vmatprep.subr.bf16.mxu1 %v1392_v9 }
 0x32b   :  { %1255 = vmatmul.mubr.msk.f32.vlgmr.msra.gmra.mrb[8].mxu1 %vm248_vm1, %v462_v10  ;;  %v887_v10 = vld [vmem:[%s1846_s7 + $0x10] sm:$0xff] }
 0x32c   :  { %1395 = vmatpush3.bf16.msra.mxu1 %v1392_v9 }
 0x3ee   :  { %v1712_v11 = vpop.f32.mrb[6].mxu1 }
 0x3ef   :  { %v448_v12 = vpop.f32.mrb[7].mxu1 }
 0x3fe   :  { %v1256_v14 = vpop.f32.mrb[8].mxu1 }
 0x3ff   :  { %v555_v15 = vadd.f32 %v1256_v14, %v1687_v34  ;;  %v549_v17 = vpop.f32.mrb[9].mxu1  ;;  %v981_v14 = vld [vmem:[%s1847_s8] sm:$0xff] }
 0x400   :  { %v550_v18 = vadd.f32 %v549_v17, %v1685_v33  ;;  %v983_v17 = vld [vmem:[%s1847_s8 + $0x10] sm:$0xff] }
 0x401   :  { %v561_v19 = vsel %vm59_vm0, %v555_v15, -inf }
 0x402   :  { %562 = vmax.xlane.f32.xlu1 %v561_v19  ;;  %v558_v21 = vsel %vm59_vm0, %v550_v18, -inf  ;;  %v984_v19 = vld [vmem:[%s1847_s8 + $0x18] sm:$0xff] }
 0x403   :  { %559 = vmax.xlane.f32.xlu0 %v558_v21  ;;  %v1404_v21 = vpack.c.bf16 %v984_v19, %v983_v17 }
 0x413   :  { %1467 = vrot.lane.b32.xlu1 %v1668_v29, %s1540_s2 }
 0x48f   :  { %v563_v20 = vpop.xlane.xlu1 %562 }
 0x490   :  { %v565_v23 = vsub.f32 %v555_v15, %v563_v20  ;;  %v560_v24 = vpop.xlane.xlu0 %559  ;;  %v982_v15 = vld [vmem:[%s1847_s8 + $0x8] sm:$0xff]  ;;  %v985_v20 = vld [vmem:[%s1847_s8 + $0x20] sm:$0xff] }
 0x491   :  { %v564_v25 = vsub.f32 %v550_v18, %v560_v24  ;;  %v1400_v18 = vpack.c.bf16 %v982_v15, %v981_v14 }
 0x492   :  { %v568_v26 = vmul.f32 1.442695, %v565_v23  ;;  %v986_v23 = vld [vmem:[%s1847_s8 + $0x28] sm:$0xff] }
 0x493   :  { %v566_v27 = vmul.f32 1.442695, %v564_v25  ;;  %v1468_v34 = vpop.permute.xlu1 %1467  ;;  %v1408_v24 = vpack.c.bf16 %v986_v23, %v985_v20 }
 0x494   :  { %1479 = vpow2.f32 %v568_v26  ;;  %v1470_v36 = vunpack.i.h.bf16 %v1468_v34  ;;  %v1469_v37 = vunpack.i.l.bf16 %v1468_v34 }
 0x495   :  { %1481 = vpow2.f32 %v566_v27 }
 0x49e   :  { %v1480_v28 = vpop.eup %1479 }
 0x49f   :  { %v573_v30 = vsel %vm59_vm0, %v1480_v28, 0.0  ;;  %v1482_v31 = vpop.eup %1481 }
 0x4a0   :  { %574 = vadd.xlane.f32.xlu0 %v573_v30  ;;  %v570_v32 = vsel %vm59_vm0, %v1482_v31, 0.0 }
 0x4a4   :  { %571 = vadd.xlane.f32.xlu0 %v570_v32 }
 0x4ba   :  { %1462 = vrot.lane.b32.xlu0 %v1662_v22, %s1540_s2  ;;  %v1380_v22 = vpack.c.bf16 %v1470_v36, %v1469_v37  ;;  %v1125_v37 = vld [vmem:[%s1845_s6 + $0x1] ss:$0 sm:$0xff] }
 0x52d   :  { %v575_v33 = vpop.xlane.xlu0 %574 }
 0x531   :  { %v572_v29 = vpop.xlane.xlu0 %571 }
 0x532   :  { %1483 = vrcp.f32 %v572_v29 }
 0x533   :  { %1485 = vrcp.f32 %v575_v33  ;;  %v1124_v33 = vld [vmem:[%s1845_s6] ss:$0 sm:$0xff] }
 0x534   :  { %1487 = vtanh.f32 %v838_v53  ;;  %v996_v53 = vld [vmem:[%s1847_s8 + $0x78] sm:$0xff] }
 0x535   :  { %v1463_v35 = vpop.permute.xlu0 %1462 }
 0x536   :  { %v1465_v38 = vunpack.i.h.bf16 %v1463_v35  ;;  %v1464_v39 = vunpack.i.l.bf16 %v1463_v35 }
 0x538   :  { %v1376_v40 = vpack.c.bf16 %v1465_v38, %v1464_v39 }
 0x53a   :  { %1377 = vmatprep.subr.bf16.mxu0 %v1376_v40 }
 0x53b   :  { %1379 = vmatpush3.bf16.msra.mxu0 %v1376_v40 }
 0x53c   :  { %v1484_v43 = vpop.eup %1483  ;;  %1381 = vmatprep.subr.bf16.mxu0 %v1380_v22 }
 0x53d   :  { %v1486_v45 = vpop.eup %1485  ;;  %v578_v46 = vmul.f32 %v1484_v43, %v1482_v31  ;;  %v989_v43 = vld [vmem:[%s1847_s8 + $0x40] sm:$0xff] }
 0x53e   :  { %v579_v47 = vmul.f32 %v1486_v45, %v1480_v28  ;;  %v1488_v54 = vpop.eup %1487 }
 0x53f   :  { %1383 = vmatpush3.bf16.msra.mxu0 %v1380_v22  ;;  %1265 = vmatprep.mubr.msk.f32.mxu0 %vm59_vm0, %v578_v46  ;;  %v1412_v22 = vpack.c.bf16 %v988_v42, %v987_v41  ;;  %v991_v46 = vld [vmem:[%s1847_s8 + $0x50] sm:$0xff] }
 0x540   :  { %1385 = vmatprep.subr.bf16.mxu0 %v1384_v44 }
 0x542   :  { %1266 = vmatmul.mubr.msk.f32.vlgmr.msra.gmra.mrb[2].mxu0 %vm59_vm0, %v579_v47  ;;  %v992_v47 = vld [vmem:[%s1847_s8 + $0x58] sm:$0xff] }
 0x543   :  { %1387 = vmatpush3.bf16.msra.mxu0 %v1384_v44  ;;  %v990_v44 = vld [vmem:[%s1847_s8 + $0x48] sm:$0xff]  ;;  %v1420_v48 = vpack.c.bf16 %v992_v47, %v991_v46 }
 0x544   :  { %1389 = vmatprep.subr.bf16.mxu0 %v1388_v50  ;;  %v1416_v45 = vpack.c.bf16 %v990_v44, %v989_v43 }
 0x615   :  { %v1267_v51 = vpop.f32.mrb[2].mxu0 }
 0x616   :  { %v664_v52 = vpop.f32.mrb[3].mxu0 }
 0x617   :  { %1272 = vmatprep.mubr.msk.f32.mxu0 %vm248_vm1, %v664_v52  ;;  %v995_v52 = vld [vmem:[%s1847_s8 + $0x70] sm:$0xff] }
 0x618   :  { %1273 = vmatmul.mubr.msk.f32.vlgmr.msra.gmra.mrb[4].mxu0 %vm248_vm1, %v1267_v51 }
 0x619   :  { %1391 = vmatpush3.bf16.msra.mxu0 %v1388_v50  ;;  %1279 = vmatprep.mubr.msk.f32.mxu0 %vm248_vm1, %v448_v12  ;;  %v994_v50 = vld [vmem:[%s1847_s8 + $0x68] sm:$0xff]  ;;  %s1128_s8 = sld [smem:[#allocation2 + $0x1]] }
 0x61a   :  { %1401 = vmatprep.subr.bf16.mxu0 %v1400_v18  ;;  %v1424_v51 = vpack.c.bf16 %v994_v50, %v993_v49 }
 0x620   :  { %1280 = vmatmul.mubr.msk.f32.vlgmr.msra.gmra.mrb[4].mxu0 %vm248_vm1, %v1712_v11  ;;  %v888_v11 = vld [vmem:[%s1846_s7 + $0x18] sm:$0xff]  ;;  %s1086_s7 = sshll.u32 %s1541_s24, 4  ;;  %s1087_s7 = int_to_ptr.vmem [resolvable:$true] %s1086_s7 }
 0x621   :  { %v1396_v12 = vpack.c.bf16 %v888_v11, %v887_v10  ;;  %1403 = vmatpush3.bf16.msra.mxu0 %v1400_v18  ;;  %s1511_s25 = scalar_lea.vmem %s1087_s7, 256  ;;  %p1516_p6 = scmp.lt.s32.totalorder %s1087_s7, %s1087_s7 }
 0x622   :  { %1405 = vmatprep.subr.bf16.mxu0 %v1404_v21  ;;  %p1512_p5 = scmp.ne.s32.totalorder %s1087_s7, %s1511_s25  ;;  %p1517_p7 = scmp.lt.s32.totalorder %s1511_s25, %s1511_s25 }
 0x623   :  { %1397 = vmatprep.subr.bf16.mxu1 %v1396_v12 }
 0x624   :  { %1399 = vmatpush3.bf16.msra.mxu1 %v1396_v12  ;;  %p1518_p8 = por %p1517_p7, %p1516_p6 }
 0x625   :  { %1407 = vmatpush3.bf16.msra.mxu0 %v1404_v21 }
 0x626   :  { %1409 = vmatprep.subr.bf16.mxu0 %v1408_v24  ;;  %p1519_p9 = pnand %p1518_p8, %p1512_p5 }
 0x629   :  { %1411 = vmatpush3.bf16.msra.mxu0 %v1408_v24 }
 0x62a   :  { %1413 = vmatprep.subr.bf16.mxu0 %v1412_v22 }
 0x62d   :  { %1415 = vmatpush3.bf16.msra.mxu0 %v1412_v22 }
 0x62e   :  { %1417 = vmatprep.subr.bf16.mxu0 %v1416_v45 }
 0x631   :  { %1419 = vmatpush3.bf16.msra.mxu0 %v1416_v45 }
 0x632   :  { %1421 = vmatprep.subr.bf16.mxu0 %v1420_v48 }
 0x635   :  { %1423 = vmatpush3.bf16.msra.mxu0 %v1420_v48 }
 0x636   :  { %1425 = vmatprep.subr.bf16.mxu0 %v1424_v51 }
 0x639   :  { %1427 = vmatpush3.bf16.msra.mxu0 %v1424_v51 }
 0x6f3   :  { %v1281_v55 = vpop.f32.mrb[4].mxu0 }
 0x6f4   :  { %v841_v56 = vmul.f32 %v1488_v54, %v1281_v55  ;;  %v828_v57 = vpop.f32.mrb[5].mxu0 }
 0x6f5   :  { %v840_v58 = vmul.f32 %v1488_v54, %v828_v57  ;;  %v1428_v54 = vpack.c.bf16 %v996_v53, %v995_v52 }
 0x6f6   :  { %v1742_v59 = vadd.f32 %v841_v56, %v1647_v16 }
 0x6f7   :  { %v1745_v60 = vadd.f32 %v840_v58, %v1633_v13  ;;  %1429 = vmatprep.subr.bf16.mxu0 %v1428_v54 }
 0x6f8   :  { %v847_v61 = vsel %vm59_vm0, %v1742_v59, 0.0  ;;  %1431 = vmatpush3.bf16.msra.mxu0 %v1428_v54 }
 0x6f9   :  { %848 = vadd.xlane.f32.xlu0 %v847_v61  ;;  %v844_v62 = vsel %vm59_vm0, %v1745_v60, 0.0 }
 0x6fa   :  { %845 = vadd.xlane.f32.xlu1 %v844_v62 }
 0x786   :  { %v849_v63 = vpop.xlane.xlu0 %848 }
 0x787   :  { %v852_v0 = vmul.f32 0.03125, %v849_v63  ;;  %v846_v1 = vpop.xlane.xlu1 %845 }
 0x788   :  { %v851_v2 = vmul.f32 0.03125, %v846_v1 }
 0x789   :  { %v854_v3 = vsub.f32 %v1742_v59, %v852_v0 }
 0x78a   :  { %v853_v16 = vsub.f32 %v1745_v60, %v851_v2 }
 0x78b   :  { %v856_v4 = vmul.f32 %v854_v3, %v854_v3 }
 0x78c   :  { %v855_v5 = vmul.f32 %v853_v16, %v853_v16 }
 0x78d   :  { %v860_v13 = vsel %vm59_vm0, %v856_v4, 0.0  ;;  %v1073_v4 = vstv %s1128_s8 }
 0x78e   :  { %861 = vadd.xlane.f32.xlu1 %v860_v13  ;;  %v857_v6 = vsel %vm59_vm0, %v855_v5, 0.0 }
 0x78f   :  { %858 = vadd.xlane.f32.xlu0 %v857_v6 }
 0x81b   :  { %v862_v25 = vpop.xlane.xlu1 %861 }
 0x81c   :  { %v864_v26 = vmul.f32 0.03125, %v862_v25  ;;  %v859_v27 = vpop.xlane.xlu0 %858 }
 0x81d   :  { %v863_v28 = vmul.f32 0.03125, %v859_v27 }
 0x81e   :  { %v866_v30 = vadd.f32 1e-05, %v864_v26 }
 0x81f   :  { %v865_v31 = vadd.f32 1e-05, %v863_v28 }
 0x820   :  { %1489 = vrsqrt.f32 %v866_v30 }
 0x821   :  { %1491 = vrsqrt.f32 %v865_v31 }
 0x82a   :  { %v1490_v32 = vpop.eup %1489 }
 0x82b   :  { %v1492_v29 = vpop.eup %1491  ;;  %v870_v34 = vmul.f32 %v1490_v32, %v854_v3 }
 0x82c   :  { %v869_v35 = vmul.f32 %v1492_v29, %v853_v16 }
 0x82d   :  { %v877_v36 = vmul.f32 %v1124_v33, %v870_v34 }
 0x82e   :  { %v876_v38 = vmul.f32 %v1124_v33, %v869_v35 }
 0x82f   :  { %v884_v40 = vadd.f32 %v1125_v37, %v877_v36 }
 0x830   :  { %v883_v39 = vadd.f32 %v1125_v37, %v876_v38 }
 0x832   :  { %1290 = vmatprep.mubr.msk.f32.mxu1 %vm59_vm0, %v883_v39 }
 0x833   :  { %1291 = vmatmul.mubr.msk.f32.vlgmr.msra.gmra.mrb[10].mxu1 %vm59_vm0, %v884_v40 }
 0x906   :  { %v1292_v55 = vpop.f32.mrb[10].mxu1 }
 0x907   :  { %v974_v56 = vmul.f32 0.70710677, %v1292_v55  ;;  %v961_v57 = vpop.f32.mrb[11].mxu1  ;;  %v971_v2 = vmul.f32 0.5, %v1292_v55 }
 0x908   :  { %v973_v58 = vmul.f32 0.70710677, %v961_v57  ;;  %v970_v0 = vmul.f32 0.5, %v961_v57 }
 0x909   :  { %1493 = verf.f32 %v974_v56 }
 0x90a   :  { %1495 = verf.f32 %v973_v58 }
 0x90b   :  { %1497 = vtanh.f32 %v1073_v4 }
 0x913   :  { %v1494_v61 = vpop.eup %1493 }
 0x914   :  { %v1496_v62 = vpop.eup %1495  ;;  %v978_v63 = vadd.f32 1.0, %v1494_v61 }
 0x915   :  { %v977_v1 = vadd.f32 1.0, %v1496_v62  ;;  %v1498_v5 = vpop.eup %1497 }
 0x916   :  { %v980_v16 = vmul.f32 %v978_v63, %v971_v2 }
 0x917   :  { %v979_v3 = vmul.f32 %v977_v1, %v970_v0 }
 0x919   :  { %1325 = vmatprep.mubr.f32.mxu0 %v979_v3 }
 0x91a   :  { %1326 = vmatmul.mubr.f32.vlgmr.msra.gmra.mrb[6].mxu0 %v980_v16 }
 0x9ed   :  { %v1327_v13 = vpop.f32.mrb[6].mxu0 }
 0x9ee   :  { %v1076_v6 = vmul.f32 %v1498_v5, %v1327_v13  ;;  %v1063_v7 = vpop.f32.mrb[7].mxu0 }
 0x9ef   :  { %v1075_v8 = vmul.f32 %v1498_v5, %v1063_v7 }
 0x9f0   :  { %v1078_v9 = vadd.f32 %v1076_v6, %v1742_v59 }
 0x9f1   :  { %v1077_v10 = vadd.f32 %v1075_v8, %v1745_v60 }
 0x9f2   :  { %1080 = vst.msk [vmem:[#allocation5 + $0x8] sm:$0xff] %vm59_vm0, %v1078_v9 }
 0x9f3   :  { %1079 = vst.msk [vmem:[#allocation5] sm:$0xff] %vm59_vm0, %v1077_v10 }
 0x9f4   :  { %1522 = shalt.err (!%p1519_p9)
}
 0x9f5   :  { %s1523_s27 = scalar_lea.hbm %s1849_s10, 256 }
 0x9f6   :  { %p1524_p10 = scmp.ne.s32.totalorder %s1849_s10, %s1523_s27  ;;  %p1527_p11 = scmp.lt.u32.totalorder %s1523_s27, %s1849_s10 }
 0x9f8   :  { %p1529_p12 = pnand %p1527_p11, %p1524_p10 }
 0x9fa   :  { %1532 = shalt.err (!%p1529_p12)
}
 0x9fb   :  { %s1542_s12 = smov 128   ;;  %s1543_s4 = smov 8  }
 0x9fc   :  { %1092 = dma.vmem_to_hbm [thread:$0]  %s1087_s7, 256, %s1849_s10, [#allocation3], %s1542_s12, %s1542_s12, %s1543_s4  }
 0x9fd   :  { %1535 = dma.done.wait [#allocation3], 256  }
 0x9fe   :  { %1536 = vsyncadd [#allocation3], 4294967040 }
 0x9ff   :  { %1096 = vsyncpa [#allocation3], 1 }
 0xa00   :  { %1097 = vsyncpa [#allocation4], 1 }

</bundles_post_ra>
